<compile_context>
chip_gen: v7x
topology: tpu7x:2x2x1
jax: 0.10.0
libtpu: 0.0.40
codegen_flags: <defaults>
</compile_context>

<pallas_src>
import numpy as np
import jax
import jax.numpy as jnp
from jax.experimental import pallas as pl
from jax.experimental.pallas import tpu as pltpu

OFFSET_SCALE = 6.0
S_SCALE = 10000.0             # defined by the torch module; unused in forward
LANE = 128                    # TPU lane width
CHUNK_PIXELS = 64 * 128       # in-kernel row-chunk size (bounds live vregs)
MAX_BLOCK_PIXELS = 512 * 128  # per-image pixels per grid step (~768 KiB/f32 ch-set)
MAX_BATCH_BLOCK = 4           # images per grid step (amortizes per-step overhead)


def _round_up(x, m):
    return -(-x // m) * m


# ----------------------------------------------------------------------------
# Pallas kernel:
#   out[b, c, r, l] = sum_k M'[n, c, k] * (off[b, k, r, l] + mean'[k, r, l])
#                     + M'[n, c, 3]             with  M' = [6*R | t], mean' = mean/6
# ----------------------------------------------------------------------------
def _rebuild_kernel(m_ref, off_ref, mean_ref, out_ref):
    # m_ref   : (N*12,) f32 SMEM; image n -> [6R00,6R01,6R02,t0, 6R10,..,t1, 6R20,..,t2]
    # off_ref : (B_BLK, 3, TR, L) f32  -- raw offsets (unscaled)
    # mean_ref: (3, TR, L) f32         -- mean posmap / 6 (shared across batch)
    # out_ref : (B_BLK, 3, TR, L) f32
    b_blk, _, tr, lanes = off_ref.shape
    nb = pl.program_id(1)                        # batch-block index (inner grid axis)

    # Row-chunk size: bound x0..x2 live ranges to a few vregs (no VMEM spills).
    chunk = max(8, (CHUNK_PIXELS // max(lanes, 1)) // 8 * 8)

    for b in range(b_blk):                       # static unroll over images in block
        base = (nb * b_blk + b) * 12
        m = [m_ref[base + i] for i in range(12)]  # 12 scalar SMEM reads per image
        for r0 in range(0, tr, chunk):           # static chunk loop (tr is static)
            sl = slice(r0, min(r0 + chunk, tr))
            x0 = off_ref[b, 0, sl, :] + mean_ref[0, sl, :]
            x1 = off_ref[b, 1, sl, :] + mean_ref[1, sl, :]
            x2 = off_ref[b, 2, sl, :] + mean_ref[2, sl, :]
            for c in range(3):                   # static unroll over output channels
                out_ref[b, c, sl, :] = (m[4 * c + 0] * x0
                                        + m[4 * c + 1] * x1
                                        + m[4 * c + 2] * x2
                                        + m[4 * c + 3])


def rebuild_posmap(off4, mean3, m_flat, *, b_blk, tile_rows):
    # off4  : (N, 3, R, L) f32, mean3: (3, R, L) f32, m_flat: (N*12,) f32
    N, C, R, L = off4.shape
    grid = (pl.cdiv(R, tile_rows), N // b_blk)   # pixel-tile outer, batch inner ->
                                                 # mean tile fetched once per row tile.
    return pl.pallas_call(
        _rebuild_kernel,
        out_shape=jax.ShapeDtypeStruct((N, C, R, L), jnp.float32),
        grid_spec=pltpu.PrefetchScalarGridSpec(
            num_scalar_prefetch=0,
            grid=grid,
            in_specs=[
                pl.BlockSpec(memory_space=pltpu.MemorySpace.SMEM),        # (N*12,)
                pl.BlockSpec((b_blk, C, tile_rows, L), lambda t, nb: (nb, 0, t, 0)),
                pl.BlockSpec((C, tile_rows, L), lambda t, nb: (0, t, 0)),
            ],
            out_specs=pl.BlockSpec((b_blk, C, tile_rows, L),
                                   lambda t, nb: (nb, 0, t, 0)),
        ),
        compiler_params=pltpu.CompilerParams(
            # On v7x, consider pltpu.CORE_PARALLEL on one axis if a trace shows
            # a single TensorCore doing all the work.
            dimension_semantics=("parallel", "parallel"),
            vmem_limit_bytes=32 * 1024 * 1024,
        ),
    )(m_flat, off4, mean3)


# ----------------------------------------------------------------------------
# Glue (plain JAX): visibility weights + weighted Kabsch similarity (3x3 SVD)
# ----------------------------------------------------------------------------
def _visibility_at_keypoints(posmap, rows, cols):
    # Equals calculateVisibility(posmap)[:, rows, cols] without building the
    # full map.  posmap: (N, 3, H, W); rows/cols: (K,) int32.
    p = posmap[:, 0:2, rows, cols]                                   # (N, 2, K)
    rt = posmap[:, 0:2, jnp.maximum(rows - 1, 0), cols]              # "right_shift"
    dn = posmap[:, 0:2, rows, jnp.maximum(cols - 1, 0)]              # "down_shift"
    rt = jnp.where((rows >= 1)[None, None, :], rt, 0.0)
    dn = jnp.where((cols >= 1)[None, None, :], dn, 0.0)
    ab = p - rt
    bc = dn - rt
    z = ab[:, 0] * bc[:, 1] - ab[:, 1] * bc[:, 0]                    # (N, K)
    return jnp.where(z > 0, 1.0, jnp.where(z < 0, 0.1, z))


def _kpt_to_tform_weighted(kpt_src, kpt_dst, w):
    # Single-sample version of torch kpt2TformBatchWeighted (no det/reflection
    # fix -- the torch code does not apply one either).
    # kpt_src, kpt_dst: (K, 3); w: (K,) diagonal of the weight matrix.
    s1 = jnp.sum(jnp.linalg.norm(kpt_src - kpt_src[33:34], axis=1))
    s2 = jnp.sum(jnp.linalg.norm(kpt_dst - kpt_dst[33:34], axis=1))
    scale = s2 / s1
    A = kpt_src * scale
    B = kpt_dst
    AA = A - A.mean(axis=0, keepdims=True)
    BB = B - B.mean(axis=0, keepdims=True)
    H = (AA * w[:, None]).T @ BB                    # AA^T @ diag(w) @ BB  (3,3)
    U, S, Vt = jnp.linalg.svd(H)                    # H = U S Vt
    R = Vt.T @ U.T                                  # V @ U^T (torch.svd's V)
    t = jnp.mean(B - A @ R.T, axis=0)
    return R * scale, t                             # scaled rotation, translation


# ----------------------------------------------------------------------------
# Full forward (P2RNVisibilityRebuildModule.forward)
# ----------------------------------------------------------------------------
def p2rn_visibility_rebuild(Offset, Posmap_kpt, mean_posmap_chw, uv_kpt,
                            attention=None, *,
                            max_block_pixels=MAX_BLOCK_PIXELS,
                            max_batch_block=MAX_BATCH_BLOCK):
    # Offset, Posmap_kpt: (N, 3, H, W) f32; mean_posmap_chw: (3, H, W) f32
    # uv_kpt: (68, 2) int32 indices into the two spatial dims.
    N, C, H, W = Offset.shape
    P = H * W
    rows_idx = uv_kpt[:, 0]
    cols_idx = uv_kpt[:, 1]

    # -- keypoint gathers + visibility weights (small; plain JAX) --
    mean_k = mean_posmap_chw[:, rows_idx, cols_idx]                  # (3, K)
    off_k = Offset[:, :, rows_idx, cols_idx]                         # (N, 3, K)
    kpt_src = jnp.transpose(off_k * OFFSET_SCALE + mean_k[None], (0, 2, 1))
    kpt_dst = jnp.transpose(Posmap_kpt[:, :, rows_idx, cols_idx], (0, 2, 1))
    weight = _visibility_at_keypoints(Posmap_kpt, rows_idx, cols_idx)  # (N, K)

    if attention is not None:
        # TODO(synk): torch indexes `attention` without bounds checking; JAX
        # gathers clamp out-of-range indices, so degenerate keypoints differ.
        kpt_ind = (kpt_dst[:, :, :2] * 280.0).astype(jnp.int32)
        w_at = jax.vmap(lambda att, ind: att[0, ind[:, 1] // 8, ind[:, 0] // 8])(
            attention, kpt_ind)
        weight = weight * w_at

    R, t = jax.vmap(_kpt_to_tform_weighted)(kpt_src, kpt_dst, weight)

    # Fold OFFSET_SCALE into static data:
    #   out = R @ (6*off + mean) + t  ==  (6R) @ (off + mean/6) + t
    M_flat = jnp.concatenate([R * OFFSET_SCALE, t[:, :, None]],
                             axis=2).reshape(N * 12).astype(jnp.float32)
    off_f32 = Offset.astype(jnp.float32)
    mean_scaled = mean_posmap_chw.astype(jnp.float32) / OFFSET_SCALE

    # -- pick the pixel view: lane-dense (rows, 128) when free, else (H, W) --
    # Both are pure metadata reshapes: NO jnp.pad, NO output slice.
    if P % LANE == 0:
        rows, lanes = P // LANE, LANE
        off_view = off_f32.reshape(N, C, rows, lanes)
        mean_view = mean_scaled.reshape(C, rows, lanes)
    else:
        rows, lanes = H, W                       # lanes = full W (allowed by Pallas)
        off_view = off_f32
        mean_view = mean_scaled

    # Row tile: multiple of 8 (ragged last tile handled by Pallas masked writes)
    # or the full extent.  No host-side padding anywhere.
    row_cap = max(8, (max_block_pixels // lanes) // 8 * 8)
    tile_rows = min(row_cap, _round_up(rows, 8))
    if tile_rows >= rows:
        tile_rows = rows

    # Batch block: largest divisor of N that is <= max_batch_block.
    b_blk = 1
    for b in range(min(N, max_batch_block), 0, -1):
        if N % b == 0:
            b_blk = b
            break

    out4 = rebuild_posmap(off_view, mean_view, M_flat,
                          b_blk=b_blk, tile_rows=tile_rows)
    return out4.reshape(N, C, H, W)


# ----------------------------------------------------------------------------
# Pure-JAX reference mirroring the torch module (for a sanity check)
# ----------------------------------------------------------------------------
def _reference(Offset, Posmap_kpt, mean_posmap_chw, uv_kpt):
    N, C, H, W = Offset.shape
    offsetmap = Offset * OFFSET_SCALE + mean_posmap_chw[None]        # NCHW
    offsetmap_nhwc = jnp.transpose(offsetmap, (0, 2, 3, 1))
    kptmap = jnp.transpose(Posmap_kpt, (0, 2, 3, 1))

    # calculateVisibility, full map
    down_shift = jnp.zeros_like(Posmap_kpt).at[:, :, :, 1:].set(
        Posmap_kpt[:, :, :, :-1])
    right_shift = jnp.zeros_like(Posmap_kpt).at[:, :, 1:, :].set(
        Posmap_kpt[:, :, :-1, :])
    ab = Posmap_kpt - right_shift
    bc = down_shift - right_shift
    z = ab[:, 0] * bc[:, 1] - ab[:, 1] * bc[:, 0]
    vis = jnp.where(z > 0, 1.0, jnp.where(z < 0, 0.1, z))

    rows, cols = uv_kpt[:, 0], uv_kpt[:, 1]
    kpt_dst = kptmap[:, rows, cols]
    kpt_src = offsetmap_nhwc[:, rows, cols]
    weight = vis[:, rows, cols]
    R, t = jax.vmap(_kpt_to_tform_weighted)(kpt_src, kpt_dst, weight)

    flat = offsetmap_nhwc.reshape(N, H * W, C)
    out = jnp.einsum('npk,nck->npc', flat, R,
                     precision=jax.lax.Precision.HIGHEST) + t[:, None, :]
    return jnp.transpose(out.reshape(N, H, W, C), (0, 3, 1, 2))


def _run_case(key, N, H, W, **kw):
    C = 3
    k1, k2, k3, k4 = jax.random.split(key, 4)
    mean_posmap_hwc = jax.random.uniform(k1, (H, W, 3), jnp.float32) * 100.0
    mean_posmap_chw = jnp.transpose(mean_posmap_hwc, (2, 0, 1))      # (3, H, W)
    uv_kpt = jax.random.randint(k2, (68, 2), 0, H).astype(jnp.int32)
    Offset = jax.random.normal(k3, (N, C, H, W), jnp.float32)
    Posmap_kpt = jax.random.uniform(k4, (N, C, H, W), jnp.float32) * 120.0

    out = jax.block_until_ready(
        p2rn_visibility_rebuild(Offset, Posmap_kpt, mean_posmap_chw, uv_kpt, **kw))
    ref = jax.block_until_ready(
        _reference(Offset, Posmap_kpt, mean_posmap_chw, uv_kpt))
    assert out.shape == (N, C, H, W)
    np.testing.assert_allclose(np.asarray(out), np.asarray(ref),
                               rtol=2e-3, atol=2e-2)


if __name__ == "__main__":
    key = jax.random.PRNGKey(0)
    k1, k2, k3 = jax.random.split(key, 3)

    # 1) Primary small shape: lane-dense path (H*W % 128 == 0), batch block of 2.
    _run_case(k1, N=2, H=16, W=16)
    # 2) Non-128-divisible spatial size: direct (H, W) tiling path, no padding.
    _run_case(k2, N=3, H=20, W=20)
    # 3) Multi-row-tile grid with a ragged last tile (masked boundary writes)
    #    and one image per batch block (exercises the batch-block indexing).
    _run_case(k3, N=2, H=48, W=48, max_block_pixels=8 * 128, max_batch_block=1)

    print("KERNEL_OK")
</pallas_src>

<mosaic_0001>
module attributes {stable_mosaic.version = 11 : i64} {
  func.func @_rebuild_kernel(%arg0: i32, %arg1: i32, %arg2: memref<24xf32, #tpu.memory_space<smem>>, %arg3: memref<2x3x2x128xf32, #tpu.memory_space<vmem>>, %arg4: memref<3x2x128xf32, #tpu.memory_space<vmem>>, %arg5: memref<2x3x2x128xf32, #tpu.memory_space<vmem>>) attributes {dimension_semantics = [#tpu.dimension_semantics<parallel>, #tpu.dimension_semantics<parallel>], iteration_bounds = array<i64: 1, 1>, scalar_prefetch = 0 : i64, scratch_operands = 0 : i64, tpu.core_type = #tpu.core_type<tc>, window_params = [{transform_indices = @transform_0, window_bounds = array<i64: 24>}, {transform_indices = @transform_1, window_bounds = array<i64: 2, 3, 2, 128>}, {transform_indices = @transform_2, window_bounds = array<i64: 3, 2, 128>}, {transform_indices = @transform_3, window_bounds = array<i64: 2, 3, 2, 128>}]} {
    %c2_i32 = arith.constant 2 : i32
    %0 = arith.muli %arg1, %c2_i32 : i32
    %c0_i32 = arith.constant 0 : i32
    %1 = arith.addi %0, %c0_i32 : i32
    %c12_i32 = arith.constant 12 : i32
    %2 = arith.muli %1, %c12_i32 : i32
    %c0_i32_0 = arith.constant 0 : i32
    %3 = arith.addi %2, %c0_i32_0 : i32
    %4 = arith.index_cast %3 : i32 to index
    %5 = memref.load %arg2[%4] : memref<24xf32, #tpu.memory_space<smem>>
    %c1_i32 = arith.constant 1 : i32
    %6 = arith.addi %2, %c1_i32 : i32
    %7 = arith.index_cast %6 : i32 to index
    %8 = memref.load %arg2[%7] : memref<24xf32, #tpu.memory_space<smem>>
    %c2_i32_1 = arith.constant 2 : i32
    %9 = arith.addi %2, %c2_i32_1 : i32
    %10 = arith.index_cast %9 : i32 to index
    %11 = memref.load %arg2[%10] : memref<24xf32, #tpu.memory_space<smem>>
    %c3_i32 = arith.constant 3 : i32
    %12 = arith.addi %2, %c3_i32 : i32
    %13 = arith.index_cast %12 : i32 to index
    %14 = memref.load %arg2[%13] : memref<24xf32, #tpu.memory_space<smem>>
    %c4_i32 = arith.constant 4 : i32
    %15 = arith.addi %2, %c4_i32 : i32
    %16 = arith.index_cast %15 : i32 to index
    %17 = memref.load %arg2[%16] : memref<24xf32, #tpu.memory_space<smem>>
    %c5_i32 = arith.constant 5 : i32
    %18 = arith.addi %2, %c5_i32 : i32
    %19 = arith.index_cast %18 : i32 to index
    %20 = memref.load %arg2[%19] : memref<24xf32, #tpu.memory_space<smem>>
    %c6_i32 = arith.constant 6 : i32
    %21 = arith.addi %2, %c6_i32 : i32
    %22 = arith.index_cast %21 : i32 to index
    %23 = memref.load %arg2[%22] : memref<24xf32, #tpu.memory_space<smem>>
    %c7_i32 = arith.constant 7 : i32
    %24 = arith.addi %2, %c7_i32 : i32
    %25 = arith.index_cast %24 : i32 to index
    %26 = memref.load %arg2[%25] : memref<24xf32, #tpu.memory_space<smem>>
    %c8_i32 = arith.constant 8 : i32
    %27 = arith.addi %2, %c8_i32 : i32
    %28 = arith.index_cast %27 : i32 to index
    %29 = memref.load %arg2[%28] : memref<24xf32, #tpu.memory_space<smem>>
    %c9_i32 = arith.constant 9 : i32
    %30 = arith.addi %2, %c9_i32 : i32
    %31 = arith.index_cast %30 : i32 to index
    %32 = memref.load %arg2[%31] : memref<24xf32, #tpu.memory_space<smem>>
    %c10_i32 = arith.constant 10 : i32
    %33 = arith.addi %2, %c10_i32 : i32
    %34 = arith.index_cast %33 : i32 to index
    %35 = memref.load %arg2[%34] : memref<24xf32, #tpu.memory_space<smem>>
    %c11_i32 = arith.constant 11 : i32
    %36 = arith.addi %2, %c11_i32 : i32
    %37 = arith.index_cast %36 : i32 to index
    %38 = memref.load %arg2[%37] : memref<24xf32, #tpu.memory_space<smem>>
    %c0 = arith.constant 0 : index
    %c0_2 = arith.constant 0 : index
    %c0_3 = arith.constant 0 : index
    %c0_4 = arith.constant 0 : index
    %39 = vector.load %arg3[%c0, %c0_2, %c0_3, %c0_4] : memref<2x3x2x128xf32, #tpu.memory_space<vmem>>, vector<1x1x2x128xf32>
    %40 = vector.shape_cast %39 : vector<1x1x2x128xf32> to vector<2x128xf32>
    %c0_5 = arith.constant 0 : index
    %c0_6 = arith.constant 0 : index
    %c0_7 = arith.constant 0 : index
    %41 = vector.load %arg4[%c0_5, %c0_6, %c0_7] : memref<3x2x128xf32, #tpu.memory_space<vmem>>, vector<1x2x128xf32>
    %42 = vector.shape_cast %41 : vector<1x2x128xf32> to vector<2x128xf32>
    %43 = arith.addf %40, %42 : vector<2x128xf32>
    %c0_8 = arith.constant 0 : index
    %c1 = arith.constant 1 : index
    %c0_9 = arith.constant 0 : index
    %c0_10 = arith.constant 0 : index
    %44 = vector.load %arg3[%c0_8, %c1, %c0_9, %c0_10] : memref<2x3x2x128xf32, #tpu.memory_space<vmem>>, vector<1x1x2x128xf32>
    %45 = vector.shape_cast %44 : vector<1x1x2x128xf32> to vector<2x128xf32>
    %c1_11 = arith.constant 1 : index
    %c0_12 = arith.constant 0 : index
    %c0_13 = arith.constant 0 : index
    %46 = vector.load %arg4[%c1_11, %c0_12, %c0_13] : memref<3x2x128xf32, #tpu.memory_space<vmem>>, vector<1x2x128xf32>
    %47 = vector.shape_cast %46 : vector<1x2x128xf32> to vector<2x128xf32>
    %48 = arith.addf %45, %47 : vector<2x128xf32>
    %c0_14 = arith.constant 0 : index
    %c2 = arith.constant 2 : index
    %c0_15 = arith.constant 0 : index
    %c0_16 = arith.constant 0 : index
    %49 = vector.load %arg3[%c0_14, %c2, %c0_15, %c0_16] : memref<2x3x2x128xf32, #tpu.memory_space<vmem>>, vector<1x1x2x128xf32>
    %50 = vector.shape_cast %49 : vector<1x1x2x128xf32> to vector<2x128xf32>
    %c2_17 = arith.constant 2 : index
    %c0_18 = arith.constant 0 : index
    %c0_19 = arith.constant 0 : index
    %51 = vector.load %arg4[%c2_17, %c0_18, %c0_19] : memref<3x2x128xf32, #tpu.memory_space<vmem>>, vector<1x2x128xf32>
    %52 = vector.shape_cast %51 : vector<1x2x128xf32> to vector<2x128xf32>
    %53 = arith.addf %50, %52 : vector<2x128xf32>
    %54 = vector.broadcast %5 : f32 to vector<2x128xf32>
    %55 = arith.mulf %54, %43 : vector<2x128xf32>
    %56 = vector.broadcast %8 : f32 to vector<2x128xf32>
    %57 = arith.mulf %56, %48 : vector<2x128xf32>
    %58 = arith.addf %55, %57 : vector<2x128xf32>
    %59 = vector.broadcast %11 : f32 to vector<2x128xf32>
    %60 = arith.mulf %59, %53 : vector<2x128xf32>
    %61 = arith.addf %58, %60 : vector<2x128xf32>
    %62 = vector.broadcast %14 : f32 to vector<2x128xf32>
    %63 = arith.addf %61, %62 : vector<2x128xf32>
    %c0_20 = arith.constant 0 : index
    %c0_21 = arith.constant 0 : index
    %c0_22 = arith.constant 0 : index
    %c0_23 = arith.constant 0 : index
    %64 = vector.load %arg5[%c0_20, %c0_21, %c0_22, %c0_23] : memref<2x3x2x128xf32, #tpu.memory_space<vmem>>, vector<1x1x2x128xf32>
    %65 = vector.shape_cast %64 : vector<1x1x2x128xf32> to vector<2x128xf32>
    %66 = vector.shape_cast %63 : vector<2x128xf32> to vector<1x1x2x128xf32>
    tpu.vector_store %arg5[%c0_20, %c0_21, %c0_22, %c0_23], %66 {strides = array<i32>} : memref<2x3x2x128xf32, #tpu.memory_space<vmem>>, vector<1x1x2x128xf32>,
    %67 = vector.broadcast %17 : f32 to vector<2x128xf32>
    %68 = arith.mulf %67, %43 : vector<2x128xf32>
    %69 = vector.broadcast %20 : f32 to vector<2x128xf32>
    %70 = arith.mulf %69, %48 : vector<2x128xf32>
    %71 = arith.addf %68, %70 : vector<2x128xf32>
    %72 = vector.broadcast %23 : f32 to vector<2x128xf32>
    %73 = arith.mulf %72, %53 : vector<2x128xf32>
    %74 = arith.addf %71, %73 : vector<2x128xf32>
    %75 = vector.broadcast %26 : f32 to vector<2x128xf32>
    %76 = arith.addf %74, %75 : vector<2x128xf32>
    %c0_24 = arith.constant 0 : index
    %c1_25 = arith.constant 1 : index
    %c0_26 = arith.constant 0 : index
    %c0_27 = arith.constant 0 : index
    %77 = vector.load %arg5[%c0_24, %c1_25, %c0_26, %c0_27] : memref<2x3x2x128xf32, #tpu.memory_space<vmem>>, vector<1x1x2x128xf32>
    %78 = vector.shape_cast %77 : vector<1x1x2x128xf32> to vector<2x128xf32>
    %79 = vector.shape_cast %76 : vector<2x128xf32> to vector<1x1x2x128xf32>
    tpu.vector_store %arg5[%c0_24, %c1_25, %c0_26, %c0_27], %79 {strides = array<i32>} : memref<2x3x2x128xf32, #tpu.memory_space<vmem>>, vector<1x1x2x128xf32>,
    %80 = vector.broadcast %29 : f32 to vector<2x128xf32>
    %81 = arith.mulf %80, %43 : vector<2x128xf32>
    %82 = vector.broadcast %32 : f32 to vector<2x128xf32>
    %83 = arith.mulf %82, %48 : vector<2x128xf32>
    %84 = arith.addf %81, %83 : vector<2x128xf32>
    %85 = vector.broadcast %35 : f32 to vector<2x128xf32>
    %86 = arith.mulf %85, %53 : vector<2x128xf32>
    %87 = arith.addf %84, %86 : vector<2x128xf32>
    %88 = vector.broadcast %38 : f32 to vector<2x128xf32>
    %89 = arith.addf %87, %88 : vector<2x128xf32>
    %c0_28 = arith.constant 0 : index
    %c2_29 = arith.constant 2 : index
    %c0_30 = arith.constant 0 : index
    %c0_31 = arith.constant 0 : index
    %90 = vector.load %arg5[%c0_28, %c2_29, %c0_30, %c0_31] : memref<2x3x2x128xf32, #tpu.memory_space<vmem>>, vector<1x1x2x128xf32>
    %91 = vector.shape_cast %90 : vector<1x1x2x128xf32> to vector<2x128xf32>
    %92 = vector.shape_cast %89 : vector<2x128xf32> to vector<1x1x2x128xf32>
    tpu.vector_store %arg5[%c0_28, %c2_29, %c0_30, %c0_31], %92 {strides = array<i32>} : memref<2x3x2x128xf32, #tpu.memory_space<vmem>>, vector<1x1x2x128xf32>,
    %c2_i32_32 = arith.constant 2 : i32
    %93 = arith.muli %arg1, %c2_i32_32 : i32
    %c1_i32_33 = arith.constant 1 : i32
    %94 = arith.addi %93, %c1_i32_33 : i32
    %c12_i32_34 = arith.constant 12 : i32
    %95 = arith.muli %94, %c12_i32_34 : i32
    %c0_i32_35 = arith.constant 0 : i32
    %96 = arith.addi %95, %c0_i32_35 : i32
    %97 = arith.index_cast %96 : i32 to index
    %98 = memref.load %arg2[%97] : memref<24xf32, #tpu.memory_space<smem>>
    %c1_i32_36 = arith.constant 1 : i32
    %99 = arith.addi %95, %c1_i32_36 : i32
    %100 = arith.index_cast %99 : i32 to index
    %101 = memref.load %arg2[%100] : memref<24xf32, #tpu.memory_space<smem>>
    %c2_i32_37 = arith.constant 2 : i32
    %102 = arith.addi %95, %c2_i32_37 : i32
    %103 = arith.index_cast %102 : i32 to index
    %104 = memref.load %arg2[%103] : memref<24xf32, #tpu.memory_space<smem>>
    %c3_i32_38 = arith.constant 3 : i32
    %105 = arith.addi %95, %c3_i32_38 : i32
    %106 = arith.index_cast %105 : i32 to index
    %107 = memref.load %arg2[%106] : memref<24xf32, #tpu.memory_space<smem>>
    %c4_i32_39 = arith.constant 4 : i32
    %108 = arith.addi %95, %c4_i32_39 : i32
    %109 = arith.index_cast %108 : i32 to index
    %110 = memref.load %arg2[%109] : memref<24xf32, #tpu.memory_space<smem>>
    %c5_i32_40 = arith.constant 5 : i32
    %111 = arith.addi %95, %c5_i32_40 : i32
    %112 = arith.index_cast %111 : i32 to index
    %113 = memref.load %arg2[%112] : memref<24xf32, #tpu.memory_space<smem>>
    %c6_i32_41 = arith.constant 6 : i32
    %114 = arith.addi %95, %c6_i32_41 : i32
    %115 = arith.index_cast %114 : i32 to index
    %116 = memref.load %arg2[%115] : memref<24xf32, #tpu.memory_space<smem>>
    %c7_i32_42 = arith.constant 7 : i32
    %117 = arith.addi %95, %c7_i32_42 : i32
    %118 = arith.index_cast %117 : i32 to index
    %119 = memref.load %arg2[%118] : memref<24xf32, #tpu.memory_space<smem>>
    %c8_i32_43 = arith.constant 8 : i32
    %120 = arith.addi %95, %c8_i32_43 : i32
    %121 = arith.index_cast %120 : i32 to index
    %122 = memref.load %arg2[%121] : memref<24xf32, #tpu.memory_space<smem>>
    %c9_i32_44 = arith.constant 9 : i32
    %123 = arith.addi %95, %c9_i32_44 : i32
    %124 = arith.index_cast %123 : i32 to index
    %125 = memref.load %arg2[%124] : memref<24xf32, #tpu.memory_space<smem>>
    %c10_i32_45 = arith.constant 10 : i32
    %126 = arith.addi %95, %c10_i32_45 : i32
    %127 = arith.index_cast %126 : i32 to index
    %128 = memref.load %arg2[%127] : memref<24xf32, #tpu.memory_space<smem>>
    %c11_i32_46 = arith.constant 11 : i32
    %129 = arith.addi %95, %c11_i32_46 : i32
    %130 = arith.index_cast %129 : i32 to index
    %131 = memref.load %arg2[%130] : memref<24xf32, #tpu.memory_space<smem>>
    %c1_47 = arith.constant 1 : index
    %c0_48 = arith.constant 0 : index
    %c0_49 = arith.constant 0 : index
    %c0_50 = arith.constant 0 : index
    %132 = vector.load %arg3[%c1_47, %c0_48, %c0_49, %c0_50] : memref<2x3x2x128xf32, #tpu.memory_space<vmem>>, vector<1x1x2x128xf32>
    %133 = vector.shape_cast %132 : vector<1x1x2x128xf32> to vector<2x128xf32>
    %c0_51 = arith.constant 0 : index
    %c0_52 = arith.constant 0 : index
    %c0_53 = arith.constant 0 : index
    %134 = vector.load %arg4[%c0_51, %c0_52, %c0_53] : memref<3x2x128xf32, #tpu.memory_space<vmem>>, vector<1x2x128xf32>
    %135 = vector.shape_cast %134 : vector<1x2x128xf32> to vector<2x128xf32>
    %136 = arith.addf %133, %135 : vector<2x128xf32>
    %c1_54 = arith.constant 1 : index
    %c1_55 = arith.constant 1 : index
    %c0_56 = arith.constant 0 : index
    %c0_57 = arith.constant 0 : index
    %137 = vector.load %arg3[%c1_54, %c1_55, %c0_56, %c0_57] : memref<2x3x2x128xf32, #tpu.memory_space<vmem>>, vector<1x1x2x128xf32>
    %138 = vector.shape_cast %137 : vector<1x1x2x128xf32> to vector<2x128xf32>
    %c1_58 = arith.constant 1 : index
    %c0_59 = arith.constant 0 : index
    %c0_60 = arith.constant 0 : index
    %139 = vector.load %arg4[%c1_58, %c0_59, %c0_60] : memref<3x2x128xf32, #tpu.memory_space<vmem>>, vector<1x2x128xf32>
    %140 = vector.shape_cast %139 : vector<1x2x128xf32> to vector<2x128xf32>
    %141 = arith.addf %138, %140 : vector<2x128xf32>
    %c1_61 = arith.constant 1 : index
    %c2_62 = arith.constant 2 : index
    %c0_63 = arith.constant 0 : index
    %c0_64 = arith.constant 0 : index
    %142 = vector.load %arg3[%c1_61, %c2_62, %c0_63, %c0_64] : memref<2x3x2x128xf32, #tpu.memory_space<vmem>>, vector<1x1x2x128xf32>
    %143 = vector.shape_cast %142 : vector<1x1x2x128xf32> to vector<2x128xf32>
    %c2_65 = arith.constant 2 : index
    %c0_66 = arith.constant 0 : index
    %c0_67 = arith.constant 0 : index
    %144 = vector.load %arg4[%c2_65, %c0_66, %c0_67] : memref<3x2x128xf32, #tpu.memory_space<vmem>>, vector<1x2x128xf32>
    %145 = vector.shape_cast %144 : vector<1x2x128xf32> to vector<2x128xf32>
    %146 = arith.addf %143, %145 : vector<2x128xf32>
    %147 = vector.broadcast %98 : f32 to vector<2x128xf32>
    %148 = arith.mulf %147, %136 : vector<2x128xf32>
    %149 = vector.broadcast %101 : f32 to vector<2x128xf32>
    %150 = arith.mulf %149, %141 : vector<2x128xf32>
    %151 = arith.addf %148, %150 : vector<2x128xf32>
    %152 = vector.broadcast %104 : f32 to vector<2x128xf32>
    %153 = arith.mulf %152, %146 : vector<2x128xf32>
    %154 = arith.addf %151, %153 : vector<2x128xf32>
    %155 = vector.broadcast %107 : f32 to vector<2x128xf32>
    %156 = arith.addf %154, %155 : vector<2x128xf32>
    %c1_68 = arith.constant 1 : index
    %c0_69 = arith.constant 0 : index
    %c0_70 = arith.constant 0 : index
    %c0_71 = arith.constant 0 : index
    %157 = vector.load %arg5[%c1_68, %c0_69, %c0_70, %c0_71] : memref<2x3x2x128xf32, #tpu.memory_space<vmem>>, vector<1x1x2x128xf32>
    %158 = vector.shape_cast %157 : vector<1x1x2x128xf32> to vector<2x128xf32>
    %159 = vector.shape_cast %156 : vector<2x128xf32> to vector<1x1x2x128xf32>
    tpu.vector_store %arg5[%c1_68, %c0_69, %c0_70, %c0_71], %159 {strides = array<i32>} : memref<2x3x2x128xf32, #tpu.memory_space<vmem>>, vector<1x1x2x128xf32>,
    %160 = vector.broadcast %110 : f32 to vector<2x128xf32>
    %161 = arith.mulf %160, %136 : vector<2x128xf32>
    %162 = vector.broadcast %113 : f32 to vector<2x128xf32>
    %163 = arith.mulf %162, %141 : vector<2x128xf32>
    %164 = arith.addf %161, %163 : vector<2x128xf32>
    %165 = vector.broadcast %116 : f32 to vector<2x128xf32>
    %166 = arith.mulf %165, %146 : vector<2x128xf32>
    %167 = arith.addf %164, %166 : vector<2x128xf32>
    %168 = vector.broadcast %119 : f32 to vector<2x128xf32>
    %169 = arith.addf %167, %168 : vector<2x128xf32>
    %c1_72 = arith.constant 1 : index
    %c1_73 = arith.constant 1 : index
    %c0_74 = arith.constant 0 : index
    %c0_75 = arith.constant 0 : index
    %170 = vector.load %arg5[%c1_72, %c1_73, %c0_74, %c0_75] : memref<2x3x2x128xf32, #tpu.memory_space<vmem>>, vector<1x1x2x128xf32>
    %171 = vector.shape_cast %170 : vector<1x1x2x128xf32> to vector<2x128xf32>
    %172 = vector.shape_cast %169 : vector<2x128xf32> to vector<1x1x2x128xf32>
    tpu.vector_store %arg5[%c1_72, %c1_73, %c0_74, %c0_75], %172 {strides = array<i32>} : memref<2x3x2x128xf32, #tpu.memory_space<vmem>>, vector<1x1x2x128xf32>,
    %173 = vector.broadcast %122 : f32 to vector<2x128xf32>
    %174 = arith.mulf %173, %136 : vector<2x128xf32>
    %175 = vector.broadcast %125 : f32 to vector<2x128xf32>
    %176 = arith.mulf %175, %141 : vector<2x128xf32>
    %177 = arith.addf %174, %176 : vector<2x128xf32>
    %178 = vector.broadcast %128 : f32 to vector<2x128xf32>
    %179 = arith.mulf %178, %146 : vector<2x128xf32>
    %180 = arith.addf %177, %179 : vector<2x128xf32>
    %181 = vector.broadcast %131 : f32 to vector<2x128xf32>
    %182 = arith.addf %180, %181 : vector<2x128xf32>
    %c1_76 = arith.constant 1 : index
    %c2_77 = arith.constant 2 : index
    %c0_78 = arith.constant 0 : index
    %c0_79 = arith.constant 0 : index
    %183 = vector.load %arg5[%c1_76, %c2_77, %c0_78, %c0_79] : memref<2x3x2x128xf32, #tpu.memory_space<vmem>>, vector<1x1x2x128xf32>
    %184 = vector.shape_cast %183 : vector<1x1x2x128xf32> to vector<2x128xf32>
    %185 = vector.shape_cast %182 : vector<2x128xf32> to vector<1x1x2x128xf32>
    tpu.vector_store %arg5[%c1_76, %c2_77, %c0_78, %c0_79], %185 {strides = array<i32>} : memref<2x3x2x128xf32, #tpu.memory_space<vmem>>, vector<1x1x2x128xf32>,
    return
  }
  func.func @transform_0(%arg0: i32, %arg1: i32) -> i32 {
    %c0_i32 = arith.constant 0 : i32
    %c0_i32_0 = arith.constant 0 : i32
    return %c0_i32 : i32
  }
  func.func @transform_1(%arg0: i32, %arg1: i32) -> (i32, i32, i32, i32) {
    %c0_i32 = arith.constant 0 : i32
    %c0_i32_0 = arith.constant 0 : i32
    %c0_i32_1 = arith.constant 0 : i32
    return %arg1, %c0_i32, %arg0, %c0_i32_0 : i32, i32, i32, i32
  }
  func.func @transform_2(%arg0: i32, %arg1: i32) -> (i32, i32, i32) {
    %c0_i32 = arith.constant 0 : i32
    %c0_i32_0 = arith.constant 0 : i32
    %c0_i32_1 = arith.constant 0 : i32
    return %c0_i32, %arg0, %c0_i32_0 : i32, i32, i32
  }
  func.func @transform_3(%arg0: i32, %arg1: i32) -> (i32, i32, i32, i32) {
    %c0_i32 = arith.constant 0 : i32
    %c0_i32_0 = arith.constant 0 : i32
    %c0_i32_1 = arith.constant 0 : i32
    return %arg1, %c0_i32, %arg0, %c0_i32_0 : i32, i32, i32, i32
  }
}

</mosaic_0001>

<bundles_post_ra>
// kernel: tpu_custom_call.1
= control target key start
LH: loop header
LB: loop body
LE: loop exit
PB: predicated region body
PF: predicated region fallthrough
CT: control target
= control target key end

     0   :  { %8 = vsyncpa [#allocation5], 0  ;;  %s438_s0 = inlined_call_operand.hbm [shape: f32[24], index: 0, kind: input, shape index: {}]   ;;  %s439_s1 = inlined_call_operand.hbm [shape: f32[2,3,2,128], index: 1, kind: input, shape index: {}]   ;;  %s440_s2 = inlined_call_operand.vmem [shape: f32[3,2,128], index: 2, kind: input, shape index: {}]   ;;  %s441_s3 = inlined_call_operand.hbm [shape: f32[2,3,2,128], index: 3, kind: output, shape index: {}]  }
   0x1   :  { %9 = vsyncpa [#allocation3], 0 }
   0x2   :  { %10 = vsyncpa [#allocation4], 0  ;;  %s236_s14 = scalar_lea.hbm %s438_s0, 16 }
   0x3   :  { %p237_p0 = scmp.ne.s32.totalorder %s438_s0, %s236_s14  ;;  %p240_p1 = scmp.lt.u32.totalorder %s236_s14, %s438_s0 }
   0x5   :  { %p242_p2 = pnand %p240_p1, %p237_p0 }
   0x7   :  { %245 = shalt.err (!%p242_p2)
}
   0x8   :  { %s296_s19 = smov [#allocation2]   ;;  %s297_s22 = smov [#allocation6]  }
   0x9   :  { %18 = dma.hbm_to_smem %s438_s0, 16, %s296_s19, [#allocation5]  }
   0xa   :  { %s24_s23 = sshll.u32 %s297_s22, 4  ;;  %s246_s26 = scalar_lea.hbm %s439_s1, 192  ;;  %s25_s23 = int_to_ptr.vmem [resolvable:$true] %s24_s23 }
   0xb   :  { %p247_p3 = scmp.ne.s32.totalorder %s439_s1, %s246_s26  ;;  %p250_p4 = scmp.lt.u32.totalorder %s246_s26, %s439_s1 }
   0xd   :  { %p252_p5 = pnand %p250_p4, %p247_p3 }
   0xf   :  { %255 = shalt.err (!%p252_p5)
}
  0x10   :  { %s256_s4 = scalar_lea.vmem %s25_s23, 192  ;;  %p261_p7 = scmp.lt.s32.totalorder %s25_s23, %s25_s23 }
  0x11   :  { %p257_p6 = scmp.ne.s32.totalorder %s25_s23, %s256_s4  ;;  %p262_p8 = scmp.lt.s32.totalorder %s256_s4, %s256_s4 }
  0x13   :  { %p263_p9 = por %p262_p8, %p261_p7 }
  0x15   :  { %p264_p10 = pnand %p263_p9, %p257_p6 }
  0x17   :  { %267 = shalt.err (!%p264_p10)
}
  0x18   :  { %s298_s0 = smov 32   ;;  %s299_s5 = smov 2  }
  0x19   :  { %30 = dma.hbm_to_vmem [thread:$0]  %s439_s1, 192, %s25_s23, [#allocation3], %s298_s0, %s298_s0, %s299_s5  }
  0x1a   :  { %290 = dma.done.wait [#allocation5], 16  }
  0x1b   :  { %291 = vsyncadd [#allocation5], 4294967280 }
  0x1c   :  { %292 = dma.done.wait [#allocation3], 192  }
  0x1d   :  { %293 = vsyncadd [#allocation3], 4294967104 }
  0x1e   :  { %39 = sfence }
  0x1f   :  { %s41_s8 = sld [smem:[#allocation2]]  ;;  %s204_s9 = sld [smem:[#allocation2 + $0x1]]  ;;  %v64_v0 = vld [vmem:[#allocation6] sm:$0x3]  ;;  %v65_v1 = vld [vmem:[%s440_s2] sm:$0x3] }
  0x20   :  { %s205_s10 = sld [smem:[#allocation2 + $0x2]]  ;;  %s348_s11 = sld [smem:[#allocation2 + $0x3]]  ;;  %v68_v2 = vld [vmem:[#allocation6 + $0x2] sm:$0x3]  ;;  %v215_v3 = vld [vmem:[%s440_s2 + $0x2] sm:$0x3]  ;;  %v66_v5 = vadd.f32 %v65_v1, %v64_v0 }
  0x21   :  { %v73_v4 = vld [vmem:[#allocation6 + $0x4] sm:$0x3]  ;;  %v71_v6 = vadd.f32 %v215_v3, %v68_v2  ;;  %v216_v7 = vld [vmem:[%s440_s2 + $0x4] sm:$0x3]  ;;  %s207_s17 = sld [smem:[#allocation2 + $0x4]]  ;;  %s208_s18 = sld [smem:[#allocation2 + $0x5]] }
  0x22   :  { %v76_v8 = vadd.f32 %v216_v7, %v73_v4  ;;  %s359_s19 = sld [smem:[#allocation2 + $0x6]]  ;;  %s361_s20 = sld [smem:[#allocation2 + $0x7]]  ;;  %v139_v9 = vld [vmem:[#allocation6 + $0x6] sm:$0x3]  ;;  %v140_v10 = vld [vmem:[%s440_s2] sm:$0x3] }
  0x23   :  { %s363_s21 = sld [smem:[#allocation2 + $0x8]]  ;;  %s365_s22 = sld [smem:[#allocation2 + $0x9]]  ;;  %v143_v13 = vld [vmem:[#allocation6 + $0x8] sm:$0x3]  ;;  %v229_v17 = vld [vmem:[%s440_s2 + $0x2] sm:$0x3]  ;;  %v141_v19 = vadd.f32 %v140_v10, %v139_v9 }
  0x24   :  { %s370_s25 = sld [smem:[#allocation2 + $0xa]]  ;;  %s372_s26 = sld [smem:[#allocation2 + $0xb]]  ;;  %v145_v27 = vadd.f32 %v229_v17, %v143_v13  ;;  %v147_v28 = vld [vmem:[#allocation6 + $0xa] sm:$0x3]  ;;  %v230_v29 = vld [vmem:[%s440_s2 + $0x4] sm:$0x3] }
  0x25   :  { %v77_v11 = vstv %s41_s8  ;;  %v79_v12 = vstv %s204_s9  ;;  %s374_s27 = sld [smem:[#allocation2 + $0xc]]  ;;  %s376_s28 = sld [smem:[#allocation2 + $0xd]]  ;;  %v149_v41 = vadd.f32 %v230_v29, %v147_v28 }
  0x26   :  { %v78_v14 = vmul.f32 %v77_v11, %v66_v5  ;;  %v80_v15 = vmul.f32 %v79_v12, %v71_v6  ;;  %v82_v16 = vstv %s205_s10  ;;  %s381_s4 = sld [smem:[#allocation2 + $0xe]]  ;;  %s383_s6 = sld [smem:[#allocation2 + $0xf]]  ;;  %v85_v21 = vstv %s348_s11 }
  0x27   :  { %v83_v18 = vmul.f32 %v82_v16, %v76_v8  ;;  %v88_v22 = vstv %s207_s17  ;;  %v90_v23 = vstv %s208_s18  ;;  %s386_s7 = sld [smem:[#allocation2 + $0x10]]  ;;  %s388_s8 = sld [smem:[#allocation2 + $0x11]] }
  0x28   :  { %v81_v20 = vadd.f32 %v80_v15, %v78_v14  ;;  %v89_v24 = vmul.f32 %v88_v22, %v66_v5  ;;  %v91_v25 = vmul.f32 %v90_v23, %v71_v6  ;;  %v93_v26 = vstv %s359_s19  ;;  %s394_s12 = sld [smem:[#allocation2 + $0x12]]  ;;  %s398_s11 = sld [smem:[#allocation2 + $0x14]] }
  0x29   :  { %v94_v31 = vmul.f32 %v93_v26, %v76_v8  ;;  %v100_v32 = vstv %s363_s21  ;;  %v102_v33 = vstv %s365_s22  ;;  %s400_s13 = sld [smem:[#allocation2 + $0x15]]  ;;  %s403_s14 = sld [smem:[#allocation2 + $0x16]]  ;;  %v96_v39 = vstv %s361_s20 }
  0x2a   :  { %v84_v30 = vadd.f32 %v83_v18, %v81_v20  ;;  %v92_v34 = vadd.f32 %v91_v25, %v89_v24  ;;  %v101_v35 = vmul.f32 %v100_v32, %v66_v5  ;;  %v103_v36 = vmul.f32 %v102_v33, %v71_v6  ;;  %s406_s2 = sld [smem:[#allocation2 + $0x13]]  ;;  %s412_s15 = sld [smem:[#allocation2 + $0x17]] }
  0x2b   :  { %v105_v37 = vstv %s370_s25  ;;  %v150_v44 = vstv %s374_s27  ;;  %v152_v45 = vstv %s376_s28  ;;  %v108_v46 = vstv %s372_s26  ;;  %s300_s1 = smov [#allocation7]  }
  0x2c   :  { %v86_v38 = vadd.f32 %v85_v21, %v84_v30  ;;  %v106_v40 = vmul.f32 %v105_v37, %v76_v8  ;;  %v95_v42 = vadd.f32 %v94_v31, %v92_v34  ;;  %v104_v43 = vadd.f32 %v103_v36, %v101_v35  ;;  %s191_s16 = sshll.u32 %s300_s1, 4  ;;  %s192_s16 = int_to_ptr.vmem [resolvable:$true] %s191_s16 }
  0x2d   :  { %v151_v47 = vmul.f32 %v150_v44, %v141_v19  ;;  %v153_v48 = vmul.f32 %v152_v45, %v145_v27  ;;  %v155_v49 = vstv %s381_s4  ;;  %v162_v53 = vstv %s386_s7  ;;  %s268_s17 = scalar_lea.vmem %s192_s16, 192  ;;  %p273_p12 = scmp.lt.s32.totalorder %s192_s16, %s192_s16 }
  0x2e   :  { %87 = vst [vmem:[#allocation7] sm:$0x3] %v86_v38  ;;  %v97_v50 = vadd.f32 %v96_v39, %v95_v42  ;;  %v107_v51 = vadd.f32 %v106_v40, %v104_v43  ;;  %v156_v52 = vmul.f32 %v155_v49, %v149_v41  ;;  %v163_v55 = vmul.f32 %v162_v53, %v141_v19  ;;  %p269_p11 = scmp.ne.s32.totalorder %s192_s16, %s268_s17  ;;  %p274_p13 = scmp.lt.s32.totalorder %s268_s17, %s268_s17 }
  0x2f   :  { %v154_v54 = vadd.f32 %v153_v48, %v151_v47  ;;  %v164_v56 = vstv %s388_s8  ;;  %v167_v57 = vstv %s394_s12  ;;  %v158_v59 = vstv %s383_s6 }
  0x30   :  { %99 = vst [vmem:[#allocation7 + $0x2] sm:$0x3] %v97_v50  ;;  %v109_v58 = vadd.f32 %v108_v46, %v107_v51  ;;  %v165_v60 = vmul.f32 %v164_v56, %v145_v27  ;;  %v168_v61 = vmul.f32 %v167_v57, %v149_v41  ;;  %v174_v63 = vstv %s398_s11  ;;  %p275_p0 = por %p274_p13, %p273_p12 }
  0x31   :  { %v157_v62 = vadd.f32 %v156_v52, %v154_v54  ;;  %v176_v0 = vstv %s400_s13  ;;  %v179_v1 = vstv %s403_s14  ;;  %v175_v3 = vmul.f32 %v174_v63, %v141_v19 }
  0x32   :  { %111 = vst [vmem:[#allocation7 + $0x4] sm:$0x3] %v109_v58  ;;  %v166_v2 = vadd.f32 %v165_v60, %v163_v55  ;;  %v177_v4 = vmul.f32 %v176_v0, %v145_v27  ;;  %v180_v5 = vmul.f32 %v179_v1, %v149_v41  ;;  %v170_v7 = vstv %s406_s2  ;;  %p276_p1 = pnand %p275_p0, %p269_p11 }
  0x33   :  { %v159_v6 = vadd.f32 %v158_v59, %v157_v62  ;;  %v182_v10 = vstv %s412_s15 }
  0x34   :  { %v169_v8 = vadd.f32 %v168_v61, %v166_v2  ;;  %v178_v9 = vadd.f32 %v177_v4, %v175_v3 }
  0x35   :  { %161 = vst [vmem:[#allocation7 + $0x6] sm:$0x3] %v159_v6 }
  0x36   :  { %v171_v11 = vadd.f32 %v170_v7, %v169_v8  ;;  %v181_v12 = vadd.f32 %v180_v5, %v178_v9 }
  0x38   :  { %173 = vst [vmem:[#allocation7 + $0x8] sm:$0x3] %v171_v11  ;;  %v183_v13 = vadd.f32 %v182_v10, %v181_v12 }
  0x3a   :  { %185 = vst [vmem:[#allocation7 + $0xa] sm:$0x3] %v183_v13 }
  0x3b   :  { %279 = shalt.err (!%p276_p1)
}
  0x3c   :  { %s280_s20 = scalar_lea.hbm %s441_s3, 192 }
  0x3d   :  { %p281_p2 = scmp.ne.s32.totalorder %s441_s3, %s280_s20  ;;  %p284_p3 = scmp.lt.u32.totalorder %s280_s20, %s441_s3 }
  0x3f   :  { %p286_p4 = pnand %p284_p3, %p281_p2 }
  0x41   :  { %289 = shalt.err (!%p286_p4)
}
  0x42   :  { %197 = dma.vmem_to_hbm [thread:$0]  %s192_s16, 192, %s441_s3, [#allocation4], %s298_s0, %s298_s0, %s299_s5  }
  0x43   :  { %294 = dma.done.wait [#allocation4], 192  }
  0x44   :  { %295 = vsyncadd [#allocation4], 4294967104 }
  0x45   :  { %201 = vsyncpa [#allocation3], 1 }
  0x46   :  { %202 = vsyncpa [#allocation4], 1 }
  0x47   :  { %203 = vsyncpa [#allocation5], 1 }

</bundles_post_ra>
